<compile_context>
chip_gen: v7x
topology: tpu7x:2x2x1
jax: 0.10.0
libtpu: 0.0.40
codegen_flags: <defaults>
</compile_context>

<pallas_src>
import functools
import math

import jax
import jax.numpy as jnp
from jax.experimental import pallas as pl
from jax.experimental.pallas import tpu as pltpu


def _round_up(x, m):
    return -(-int(x) // int(m)) * int(m)


def _fma_small(x, wt, b):
    """(tn,C) @ (C,C) + b via unrolled VPU broadcast-FMAs (tiny C only).

    Two partial accumulators break the serial FMA dependency chain."""
    c = wt.shape[0]
    acc0 = jnp.broadcast_to(b, x.shape)
    acc1 = jnp.zeros(x.shape, jnp.float32)
    for i in range(c):
        term = x[:, i:i + 1] * wt[i:i + 1, :]
        if i % 2 == 0:
            acc0 = acc0 + term
        else:
            acc1 = acc1 + term
    return acc0 + acc1


def pool_line_kernel(x_ref, w1_ref, b1_ref, w2_ref, b2_ref, o_ref, acc_ref, *,
                     inv_hw, hw_total, thw, mask_tail, use_mxu):
    """x_ref: (tn, C, thw) chunk.  acc_ref: (tn, C) f32 running spatial sum."""
    k = pl.program_id(1)

    @pl.when(k == 0)
    def _init():
        acc_ref[...] = jnp.zeros_like(acc_ref)

    # Streaming partial sum over this HW chunk.  dtype=f32 on the reduce keeps the
    # accumulation in f32 without materializing an f32 copy of the whole chunk.
    x = x_ref[...]
    if mask_tail:
        # Tail block may read past HW; zero the out-of-range lanes.  Zero
        # contribution is exact for the mean since inv_hw uses the true HW.
        lane = jax.lax.broadcasted_iota(jnp.int32, x_ref.shape, dimension=2)
        x = jnp.where(k * thw + lane < hw_total, x, 0)
    acc_ref[...] += jnp.sum(x, axis=-1, dtype=jnp.float32)

    @pl.when(k == pl.num_programs(1) - 1)
    def _finalize():
        pooled = acc_ref[...] * inv_hw                     # (tn, C) f32: avgpool + view
        b1 = b1_ref[...].astype(jnp.float32)
        b2 = b2_ref[...].astype(jnp.float32)
        if use_mxu:
            # Weights are in native PyTorch (out, in) layout; contract on dim 1.
            # No wrapper transpose, no in-kernel f32 copies of the weights.
            w1 = w1_ref[...]
            w2 = w2_ref[...]
            dn = (((1,), (1,)), ((), ()))
            lhs = pooled if pooled.dtype == w1.dtype else pooled.astype(w1.dtype)
            h = jax.lax.dot_general(lhs, w1, dn,
                                    preferred_element_type=jnp.float32) + b1
            h = jnp.maximum(h, 0.0)
            hh = h if h.dtype == w2.dtype else h.astype(w2.dtype)
            y = jax.lax.dot_general(hh, w2, dn,
                                    preferred_element_type=jnp.float32) + b2
        else:
            # Tiny C: a (tn,C)@(C,C) dot is >95% MXU padding; use VPU FMAs instead.
            # Weights arrive pre-transposed (in, out) from the wrapper for this path.
            w1t = w1_ref[...].astype(jnp.float32)
            w2t = w2_ref[...].astype(jnp.float32)
            h = jnp.maximum(_fma_small(pooled, w1t, b1), 0.0)
            y = _fma_small(h, w2t, b2)
        o_ref[...] = y.astype(o_ref.dtype)


def _plan(N, C, HW, x_itemsize, w_itemsize):
    """Pick (n_tile, hw_tile, mask_tail, vmem_limit) from the chip's VMEM budget."""
    try:
        cap = int(pltpu.get_tpu_info().vmem_capacity_bytes)
    except Exception:
        cap = 64 * 1024 * 1024                      # conservative (v7x-sized) fallback

    c_sub = _round_up(C, 8)
    c_lane = _round_up(C, 128)

    # VMEM-resident side inputs (counted double-buffered to be safe): 2 weights +
    # 2 biases, stored with (8,128) tiling.
    resident = 2 * (2 * c_sub * c_lane + 2 * 8 * c_lane) * w_itemsize

    headroom = 8 << 20                              # compiler scratch / epilogue temps
    usable = cap - resident - headroom
    per_buf = max(1 << 20, min(usable // 2, 16 << 20))   # x is double-buffered

    def x_block_bytes(tn, thw):
        return tn * c_sub * _round_up(thw, 128) * x_itemsize

    # Batch-tile candidates, largest first.  tn must be a multiple of 8 or == N
    # (it is the sublane dim of the output block); for N >= 16 cap it near N/2 so
    # the "parallel" N axis has work for both v7x TensorCores.
    if N <= 8:
        cands = [N]
    else:
        cands = []
        if N < 16:
            cands.append(N)
        top = _round_up((N + 1) // 2, 8) if N >= 16 else max((N // 8) * 8, 8)
        cands += list(range(top, 7, -8))

    # Prefer a full-HW lane tile (fully contiguous per-(n,c) DMA rows, fewest grid
    # steps); shrink the batch tile toward its minimum before shrinking thw.
    tn, thw = None, None
    for cand in cands:
        if x_block_bytes(cand, HW) <= per_buf:
            tn, thw = cand, HW
            break
    if tn is None:
        tn = cands[-1]
        max_lanes = per_buf // max(1, tn * c_sub * x_itemsize)
        thw = min(max(128, (max_lanes // 128) * 128), _round_up(HW, 128))

    mask_tail = (thw < HW) and (HW % thw != 0)

    misc = (2 * x_itemsize + 4) * _round_up(tn, 8) * c_lane   # out blocks + f32 acc
    usage = resident + 2 * x_block_bytes(tn, thw) + misc + headroom
    vmem_limit = int(min(cap, max(usage, 32 << 20)))
    return tn, thw, mask_tail, vmem_limit


def pool_line(x, w1, b1, w2, b2, *, hw_tile=None, n_tile=None):
    """x: (N, C, *spatial).  w1, w2: (C, C) PyTorch-layout (out, in).  b1, b2: (C,)."""
    N, C = int(x.shape[0]), int(x.shape[1])
    HW = int(math.prod(x.shape[2:]))
    assert (w1.shape == (C, C) and w2.shape == (C, C)
            and b1.shape == (C,) and b2.shape == (C,)), \
        "PoolLine requires num_channels_in == num_channels_out"

    x3 = x.reshape(N, C, HW)                        # free view of NCHW / NCDHW
    x_item = int(x.dtype.itemsize)
    w_item = int(w1.dtype.itemsize)

    tn, thw, mask_tail, vmem_limit = _plan(N, C, HW, x_item, w_item)
    if hw_tile is not None:
        thw = int(hw_tile)
        assert thw == HW or (thw % 128 == 0 and thw <= HW), \
            "hw_tile must be the full H*W or a multiple of 128 that is <= H*W"
        mask_tail = (thw < HW) and (HW % thw != 0)
    if n_tile is not None:
        tn = int(n_tile)
        assert tn == N or tn % 8 == 0, "n_tile must equal N or be a multiple of 8"

    use_mxu = C >= 32
    if use_mxu:
        # Native (out, in) layout; the kernel contracts on dim 1 (no HBM transpose).
        w1_arg, w2_arg = w1, w2
    else:
        # Tiny C: pre-transpose for the broadcast-FMA path (negligible glue).
        w1_arg, w2_arg = jnp.transpose(w1), jnp.transpose(w2)
    b1_2d = b1.reshape(1, C)
    b2_2d = b2.reshape(1, C)

    grid = (pl.cdiv(N, tn), pl.cdiv(HW, thw))

    kernel = functools.partial(pool_line_kernel,
                               inv_hw=1.0 / float(HW),
                               hw_total=HW, thw=thw,
                               mask_tail=mask_tail, use_mxu=use_mxu)

    cost = pl.CostEstimate(
        flops=int(N * C * HW + 4 * N * C * C),
        transcendentals=0,
        bytes_accessed=int(N * C * HW * x_item + (2 * C * C + 2 * C) * w_item
                           + N * C * x_item),
    )

    return pl.pallas_call(
        kernel,
        out_shape=jax.ShapeDtypeStruct((N, C), x.dtype),
        grid=grid,
        in_specs=[
            # Streaming x tiles: pipelined HBM -> VMEM, double-buffered by default.
            pl.BlockSpec((tn, C, thw), lambda i, k: (i, 0, k)),
            # Weights / biases: constant index_map => fetched once, VMEM-resident.
            pl.BlockSpec((C, C), lambda i, k: (0, 0)),
            pl.BlockSpec((1, C), lambda i, k: (0, 0)),
            pl.BlockSpec((C, C), lambda i, k: (0, 0)),
            pl.BlockSpec((1, C), lambda i, k: (0, 0)),
        ],
        # Same output block across the HW axis => resident; written in the epilogue.
        out_specs=pl.BlockSpec((tn, C), lambda i, k: (i, 0)),
        scratch_shapes=[pltpu.VMEM((tn, C), jnp.float32)],
        compiler_params=pltpu.CompilerParams(
            dimension_semantics=("parallel", "arbitrary"),
            vmem_limit_bytes=int(vmem_limit),
        ),
        cost_estimate=cost,
    )(x3, w1_arg, b1_2d, w2_arg, b2_2d)


def pool_line_ref(x, w1, b1, w2, b2):
    """Pure-JAX reference mirroring the PyTorch forward."""
    pooled = jnp.mean(x, axis=tuple(range(2, x.ndim)))    # (N, C)
    h = jnp.maximum(pooled @ w1.T + b1, 0.0)
    return h @ w2.T + b2


if __name__ == "__main__":
    key = jax.random.PRNGKey(0)

    def init_params(k, c):
        k1, k2, k3, k4 = jax.random.split(k, 4)
        bound = 1.0 / float(c) ** 0.5
        w1 = jax.random.uniform(k1, (c, c), minval=-bound, maxval=bound, dtype=jnp.float32)
        b1 = jax.random.uniform(k2, (c,), minval=-bound, maxval=bound, dtype=jnp.float32)
        w2 = jax.random.uniform(k3, (c, c), minval=-bound, maxval=bound, dtype=jnp.float32)
        b2 = jax.random.uniform(k4, (c,), minval=-bound, maxval=bound, dtype=jnp.float32)
        return w1, b1, w2, b2

    # 1) ndims == 2, tiny C (VPU epilogue path): auto tiling and forced multi-step HW.
    k0, k1, k2 = jax.random.split(key, 3)
    N, C, H, W = 2, 4, 16, 16
    x = jax.random.normal(k0, (N, C, H, W), dtype=jnp.float32)
    w1, b1, w2, b2 = init_params(k1, C)
    ref = pool_line_ref(x, w1, b1, w2, b2)

    out = jax.block_until_ready(pool_line(x, w1, b1, w2, b2))
    assert out.shape == (N, C), out.shape
    assert jnp.allclose(out, ref, atol=1e-5, rtol=1e-5), (out, ref)

    out_ms = jax.block_until_ready(pool_line(x, w1, b1, w2, b2, hw_tile=128))
    assert jnp.allclose(out_ms, ref, atol=1e-5, rtol=1e-5), (out_ms, ref)

    # 2) Odd spatial size (HW = 225): small lane tile exercises the masked tail block.
    x_odd = jax.random.normal(k2, (N, C, 15, 15), dtype=jnp.float32)
    ref_odd = pool_line_ref(x_odd, w1, b1, w2, b2)
    out_odd = jax.block_until_ready(pool_line(x_odd, w1, b1, w2, b2, hw_tile=128))
    assert jnp.allclose(out_odd, ref_odd, atol=1e-5, rtol=1e-5), (out_odd, ref_odd)

    # 3) ndims == 3 with C >= 32: MXU epilogue path with native-layout weights.
    k3, k4 = jax.random.split(jax.random.PRNGKey(1), 2)
    N3, C3, D3, H3, W3 = 2, 32, 4, 8, 8
    x3d = jax.random.normal(k3, (N3, C3, D3, H3, W3), dtype=jnp.float32)
    w1c, b1c, w2c, b2c = init_params(k4, C3)
    ref3 = pool_line_ref(x3d, w1c, b1c, w2c, b2c)
    out3 = jax.block_until_ready(pool_line(x3d, w1c, b1c, w2c, b2c))
    assert jnp.allclose(out3, ref3, atol=1e-5, rtol=1e-5), (out3, ref3)

    print("KERNEL_OK")
</pallas_src>

<mosaic_0001>
module attributes {stable_mosaic.version = 11 : i64} {
  func.func @pool_line_kernel(%arg0: i32, %arg1: i32, %arg2: memref<2x4x256xf32, #tpu.memory_space<vmem>>, %arg3: memref<4x4xf32, #tpu.memory_space<vmem>>, %arg4: memref<1x4xf32, #tpu.memory_space<vmem>>, %arg5: memref<4x4xf32, #tpu.memory_space<vmem>>, %arg6: memref<1x4xf32, #tpu.memory_space<vmem>>, %arg7: memref<2x4xf32, #tpu.memory_space<vmem>>, %arg8: memref<2x4xf32, #tpu.memory_space<vmem>>) attributes {dimension_semantics = [#tpu.dimension_semantics<parallel>, #tpu.dimension_semantics<arbitrary>], iteration_bounds = array<i64: 1, 1>, scalar_prefetch = 0 : i64, scratch_operands = 1 : i64, tpu.core_type = #tpu.core_type<tc>, window_params = [{transform_indices = @transform_0, window_bounds = array<i64: 2, 4, 256>}, {pipeline_mode = #tpu.pipeline_mode<synchronous>, transform_indices = @transform_1, window_bounds = array<i64: 4, 4>}, {pipeline_mode = #tpu.pipeline_mode<synchronous>, transform_indices = @transform_2, window_bounds = array<i64: 1, 4>}, {pipeline_mode = #tpu.pipeline_mode<synchronous>, transform_indices = @transform_3, window_bounds = array<i64: 4, 4>}, {pipeline_mode = #tpu.pipeline_mode<synchronous>, transform_indices = @transform_4, window_bounds = array<i64: 1, 4>}, {transform_indices = @transform_5, window_bounds = array<i64: 2, 4>}]} {
    %c0_i32 = arith.constant 0 : i32
    %0 = arith.cmpi eq, %arg1, %c0_i32 : i32
    %1 = arith.extui %0 : i1 to i32
    %c0_i32_0 = arith.constant 0 : i32
    %2 = arith.cmpi ne, %1, %c0_i32_0 : i32
    scf.if %2 {
      %cst_9 = arith.constant 0.000000e+00 : f32
      %11 = vector.broadcast %cst_9 : f32 to vector<2x4xf32>
      %c0_10 = arith.constant 0 : index
      %c0_11 = arith.constant 0 : index
      %12 = vector.load %arg8[%c0_10, %c0_11] : memref<2x4xf32, #tpu.memory_space<vmem>>, vector<2x4xf32>
      tpu.vector_store %arg8[%c0_10, %c0_11], %11 {strides = array<i32>} : memref<2x4xf32, #tpu.memory_space<vmem>>, vector<2x4xf32>,
    } else {
    }
    %c0 = arith.constant 0 : index
    %c0_1 = arith.constant 0 : index
    %c0_2 = arith.constant 0 : index
    %3 = vector.load %arg2[%c0, %c0_1, %c0_2] : memref<2x4x256xf32, #tpu.memory_space<vmem>>, vector<2x4x256xf32>
    %c0_3 = arith.constant 0 : index
    %c0_4 = arith.constant 0 : index
    %4 = vector.load %arg8[%c0_3, %c0_4] : memref<2x4xf32, #tpu.memory_space<vmem>>, vector<2x4xf32>
    %cst = arith.constant dense<0.000000e+00> : vector<2x4xf32>
    %5 = vector.multi_reduction <add>, %3, %cst [2] : vector<2x4x256xf32> to vector<2x4xf32>
    %6 = arith.addf %4, %5 : vector<2x4xf32>
    %c0_5 = arith.constant 0 : index
    %c0_6 = arith.constant 0 : index
    %7 = vector.load %arg8[%c0_5, %c0_6] : memref<2x4xf32, #tpu.memory_space<vmem>>, vector<2x4xf32>
    tpu.vector_store %arg8[%c0_5, %c0_6], %6 {strides = array<i32>} : memref<2x4xf32, #tpu.memory_space<vmem>>, vector<2x4xf32>,
    %c0_i32_7 = arith.constant 0 : i32
    %8 = arith.cmpi eq, %arg1, %c0_i32_7 : i32
    %9 = arith.extui %8 : i1 to i32
    %c0_i32_8 = arith.constant 0 : i32
    %10 = arith.cmpi ne, %9, %c0_i32_8 : i32
    scf.if %10 {
      %c0_9 = arith.constant 0 : index
      %c0_10 = arith.constant 0 : index
      %11 = vector.load %arg8[%c0_9, %c0_10] : memref<2x4xf32, #tpu.memory_space<vmem>>, vector<2x4xf32>
      %cst_11 = arith.constant 3.906250e-03 : f32
      %12 = vector.broadcast %cst_11 : f32 to vector<2x4xf32>
      %13 = arith.mulf %11, %12 : vector<2x4xf32>
      %c0_12 = arith.constant 0 : index
      %c0_13 = arith.constant 0 : index
      %14 = vector.load %arg4[%c0_12, %c0_13] : memref<1x4xf32, #tpu.memory_space<vmem>>, vector<1x4xf32>
      %c0_14 = arith.constant 0 : index
      %c0_15 = arith.constant 0 : index
      %15 = vector.load %arg6[%c0_14, %c0_15] : memref<1x4xf32, #tpu.memory_space<vmem>>, vector<1x4xf32>
      %c0_16 = arith.constant 0 : index
      %c0_17 = arith.constant 0 : index
      %16 = vector.load %arg3[%c0_16, %c0_17] : memref<4x4xf32, #tpu.memory_space<vmem>>, vector<4x4xf32>
      %c0_18 = arith.constant 0 : index
      %c0_19 = arith.constant 0 : index
      %17 = vector.load %arg5[%c0_18, %c0_19] : memref<4x4xf32, #tpu.memory_space<vmem>>, vector<4x4xf32>
      %18 = vector.shape_cast %14 : vector<1x4xf32> to vector<1x4xf32>
      %19 = vector.broadcast %18 : vector<1x4xf32> to vector<2x4xf32>
      %cst_20 = arith.constant 0.000000e+00 : f32
      %20 = vector.broadcast %cst_20 : f32 to vector<2x4xf32>
      %21 = vector.extract_strided_slice %13 {offsets = [0, 0], sizes = [2, 1], strides = [1, 1]} : vector<2x4xf32> to vector<2x1xf32>
      %22 = vector.extract_strided_slice %16 {offsets = [0, 0], sizes = [1, 4], strides = [1, 1]} : vector<4x4xf32> to vector<1x4xf32>
      %23 = vector.broadcast %21 : vector<2x1xf32> to vector<2x4xf32>
      %24 = vector.broadcast %22 : vector<1x4xf32> to vector<2x4xf32>
      %25 = arith.mulf %23, %24 : vector<2x4xf32>
      %26 = arith.addf %19, %25 : vector<2x4xf32>
      %27 = vector.extract_strided_slice %13 {offsets = [0, 1], sizes = [2, 1], strides = [1, 1]} : vector<2x4xf32> to vector<2x1xf32>
      %28 = vector.extract_strided_slice %16 {offsets = [1, 0], sizes = [1, 4], strides = [1, 1]} : vector<4x4xf32> to vector<1x4xf32>
      %29 = vector.broadcast %27 : vector<2x1xf32> to vector<2x4xf32>
      %30 = vector.broadcast %28 : vector<1x4xf32> to vector<2x4xf32>
      %31 = arith.mulf %29, %30 : vector<2x4xf32>
      %32 = arith.addf %20, %31 : vector<2x4xf32>
      %33 = vector.extract_strided_slice %13 {offsets = [0, 2], sizes = [2, 1], strides = [1, 1]} : vector<2x4xf32> to vector<2x1xf32>
      %34 = vector.extract_strided_slice %16 {offsets = [2, 0], sizes = [1, 4], strides = [1, 1]} : vector<4x4xf32> to vector<1x4xf32>
      %35 = vector.broadcast %33 : vector<2x1xf32> to vector<2x4xf32>
      %36 = vector.broadcast %34 : vector<1x4xf32> to vector<2x4xf32>
      %37 = arith.mulf %35, %36 : vector<2x4xf32>
      %38 = arith.addf %26, %37 : vector<2x4xf32>
      %39 = vector.extract_strided_slice %13 {offsets = [0, 3], sizes = [2, 1], strides = [1, 1]} : vector<2x4xf32> to vector<2x1xf32>
      %40 = vector.extract_strided_slice %16 {offsets = [3, 0], sizes = [1, 4], strides = [1, 1]} : vector<4x4xf32> to vector<1x4xf32>
      %41 = vector.broadcast %39 : vector<2x1xf32> to vector<2x4xf32>
      %42 = vector.broadcast %40 : vector<1x4xf32> to vector<2x4xf32>
      %43 = arith.mulf %41, %42 : vector<2x4xf32>
      %44 = arith.addf %32, %43 : vector<2x4xf32>
      %45 = arith.addf %38, %44 : vector<2x4xf32>
      %cst_21 = arith.constant 0.000000e+00 : f32
      %46 = vector.broadcast %cst_21 : f32 to vector<2x4xf32>
      %47 = arith.maximumf %45, %46 : vector<2x4xf32>
      %48 = vector.shape_cast %15 : vector<1x4xf32> to vector<1x4xf32>
      %49 = vector.broadcast %48 : vector<1x4xf32> to vector<2x4xf32>
      %cst_22 = arith.constant 0.000000e+00 : f32
      %50 = vector.broadcast %cst_22 : f32 to vector<2x4xf32>
      %51 = vector.extract_strided_slice %47 {offsets = [0, 0], sizes = [2, 1], strides = [1, 1]} : vector<2x4xf32> to vector<2x1xf32>
      %52 = vector.extract_strided_slice %17 {offsets = [0, 0], sizes = [1, 4], strides = [1, 1]} : vector<4x4xf32> to vector<1x4xf32>
      %53 = vector.broadcast %51 : vector<2x1xf32> to vector<2x4xf32>
      %54 = vector.broadcast %52 : vector<1x4xf32> to vector<2x4xf32>
      %55 = arith.mulf %53, %54 : vector<2x4xf32>
      %56 = arith.addf %49, %55 : vector<2x4xf32>
      %57 = vector.extract_strided_slice %47 {offsets = [0, 1], sizes = [2, 1], strides = [1, 1]} : vector<2x4xf32> to vector<2x1xf32>
      %58 = vector.extract_strided_slice %17 {offsets = [1, 0], sizes = [1, 4], strides = [1, 1]} : vector<4x4xf32> to vector<1x4xf32>
      %59 = vector.broadcast %57 : vector<2x1xf32> to vector<2x4xf32>
      %60 = vector.broadcast %58 : vector<1x4xf32> to vector<2x4xf32>
      %61 = arith.mulf %59, %60 : vector<2x4xf32>
      %62 = arith.addf %50, %61 : vector<2x4xf32>
      %63 = vector.extract_strided_slice %47 {offsets = [0, 2], sizes = [2, 1], strides = [1, 1]} : vector<2x4xf32> to vector<2x1xf32>
      %64 = vector.extract_strided_slice %17 {offsets = [2, 0], sizes = [1, 4], strides = [1, 1]} : vector<4x4xf32> to vector<1x4xf32>
      %65 = vector.broadcast %63 : vector<2x1xf32> to vector<2x4xf32>
      %66 = vector.broadcast %64 : vector<1x4xf32> to vector<2x4xf32>
      %67 = arith.mulf %65, %66 : vector<2x4xf32>
      %68 = arith.addf %56, %67 : vector<2x4xf32>
      %69 = vector.extract_strided_slice %47 {offsets = [0, 3], sizes = [2, 1], strides = [1, 1]} : vector<2x4xf32> to vector<2x1xf32>
      %70 = vector.extract_strided_slice %17 {offsets = [3, 0], sizes = [1, 4], strides = [1, 1]} : vector<4x4xf32> to vector<1x4xf32>
      %71 = vector.broadcast %69 : vector<2x1xf32> to vector<2x4xf32>
      %72 = vector.broadcast %70 : vector<1x4xf32> to vector<2x4xf32>
      %73 = arith.mulf %71, %72 : vector<2x4xf32>
      %74 = arith.addf %62, %73 : vector<2x4xf32>
      %75 = arith.addf %68, %74 : vector<2x4xf32>
      %c0_23 = arith.constant 0 : index
      %c0_24 = arith.constant 0 : index
      %76 = vector.load %arg7[%c0_23, %c0_24] : memref<2x4xf32, #tpu.memory_space<vmem>>, vector<2x4xf32>
      tpu.vector_store %arg7[%c0_23, %c0_24], %75 {strides = array<i32>} : memref<2x4xf32, #tpu.memory_space<vmem>>, vector<2x4xf32>,
    } else {
    }
    return
  }
  func.func @transform_0(%arg0: i32, %arg1: i32) -> (i32, i32, i32) {
    %c0_i32 = arith.constant 0 : i32
    %c0_i32_0 = arith.constant 0 : i32
    return %arg0, %c0_i32, %arg1 : i32, i32, i32
  }
  func.func @transform_1(%arg0: i32, %arg1: i32) -> (i32, i32) {
    %c0_i32 = arith.constant 0 : i32
    %c0_i32_0 = arith.constant 0 : i32
    %c0_i32_1 = arith.constant 0 : i32
    return %c0_i32, %c0_i32_0 : i32, i32
  }
  func.func @transform_2(%arg0: i32, %arg1: i32) -> (i32, i32) {
    %c0_i32 = arith.constant 0 : i32
    %c0_i32_0 = arith.constant 0 : i32
    %c0_i32_1 = arith.constant 0 : i32
    return %c0_i32, %c0_i32_0 : i32, i32
  }
  func.func @transform_3(%arg0: i32, %arg1: i32) -> (i32, i32) {
    %c0_i32 = arith.constant 0 : i32
    %c0_i32_0 = arith.constant 0 : i32
    %c0_i32_1 = arith.constant 0 : i32
    return %c0_i32, %c0_i32_0 : i32, i32
  }
  func.func @transform_4(%arg0: i32, %arg1: i32) -> (i32, i32) {
    %c0_i32 = arith.constant 0 : i32
    %c0_i32_0 = arith.constant 0 : i32
    %c0_i32_1 = arith.constant 0 : i32
    return %c0_i32, %c0_i32_0 : i32, i32
  }
  func.func @transform_5(%arg0: i32, %arg1: i32) -> (i32, i32) {
    %c0_i32 = arith.constant 0 : i32
    %c0_i32_0 = arith.constant 0 : i32
    return %arg0, %c0_i32 : i32, i32
  }
}

</mosaic_0001>

<bundles_post_ra>
// kernel: tpu_custom_call.1
= control target key start
LH: loop header
LB: loop body
LE: loop exit
PB: predicated region body
PF: predicated region fallthrough
CT: control target
= control target key end

     0   :  { %10 = vsyncpa [#allocation4], 0  ;;  %s397_s0 = inlined_call_operand.hbm [shape: f32[2,4,256], index: 0, kind: input, shape index: {}]   ;;  %s398_s1 = inlined_call_operand.hbm [shape: f32[4,4], index: 1, kind: input, shape index: {}]   ;;  %s399_s2 = inlined_call_operand.vmem [shape: f32[1,4], index: 2, kind: input, shape index: {}]   ;;  %s400_s3 = inlined_call_operand.vmem [shape: f32[4,4], index: 3, kind: input, shape index: {}]   ;;  %s401_s4 = inlined_call_operand.vmem [shape: f32[1,4], index: 4, kind: input, shape index: {}]   ;;  %s402_s5 = inlined_call_operand.hbm [shape: f32[2,4], index: 5, kind: output, shape index: {}]  }
   0x1   :  { %11 = vsyncpa [#allocation7], 0 }
   0x2   :  { %12 = vsyncpa [#allocation5], 0  ;;  %s309_s18 = smov [#allocation3]   ;;  %s237_s22 = scalar_lea.hbm %s397_s0, 256 }
   0x3   :  { %s18_s19 = sshll.u32 %s309_s18, 4  ;;  %p238_p0 = scmp.ne.s32.totalorder %s397_s0, %s237_s22  ;;  %s19_s19 = int_to_ptr.vmem [resolvable:$true] %s18_s19 }
   0x4   :  { %p241_p1 = scmp.lt.u32.totalorder %s237_s22, %s397_s0 }
   0x6   :  { %p243_p2 = pnand %p241_p1, %p238_p0 }
   0x8   :  { %246 = shalt.err (!%p243_p2)
}
   0x9   :  { %s247_s27 = scalar_lea.vmem %s19_s19, 256  ;;  %p252_p4 = scmp.lt.s32.totalorder %s19_s19, %s19_s19 }
   0xa   :  { %p248_p3 = scmp.ne.s32.totalorder %s19_s19, %s247_s27  ;;  %p253_p5 = scmp.lt.s32.totalorder %s247_s27, %s247_s27 }
   0xc   :  { %p254_p6 = por %p253_p5, %p252_p4 }
   0xe   :  { %p255_p7 = pnand %p254_p6, %p248_p3 }
  0x10   :  { %258 = shalt.err (!%p255_p7)
}
  0x11   :  { %s310_s28 = smov 128   ;;  %s311_s29 = smov 8  }
  0x12   :  { %24 = dma.hbm_to_vmem [thread:$0]  %s397_s0, 256, %s19_s19, [#allocation4], %s310_s28, %s310_s28, %s311_s29  }
  0x13   :  { %s312_s7 = smov [#allocation6]   ;;  %s259_s11 = scalar_lea.hbm %s398_s1, 64 }
  0x14   :  { %s31_s8 = sshll.u32 %s312_s7, 4  ;;  %p260_p8 = scmp.ne.s32.totalorder %s398_s1, %s259_s11  ;;  %s32_s8 = int_to_ptr.vmem [resolvable:$true] %s31_s8 }
  0x15   :  { %p263_p9 = scmp.lt.u32.totalorder %s259_s11, %s398_s1 }
  0x17   :  { %p265_p10 = pnand %p263_p9, %p260_p8 }
  0x19   :  { %268 = shalt.err (!%p265_p10)
}
  0x1a   :  { %s269_s16 = scalar_lea.vmem %s32_s8, 64  ;;  %p274_p12 = scmp.lt.s32.totalorder %s32_s8, %s32_s8 }
  0x1b   :  { %p270_p11 = scmp.ne.s32.totalorder %s32_s8, %s269_s16  ;;  %p275_p13 = scmp.lt.s32.totalorder %s269_s16, %s269_s16 }
  0x1d   :  { %p276_p0 = por %p275_p13, %p274_p12 }
  0x1f   :  { %p277_p1 = pnand %p276_p0, %p270_p11 }
  0x21   :  { %280 = shalt.err (!%p277_p1)
}
  0x22   :  { %34 = dma.hbm_to_vmem [thread:$0]  %s398_s1, 64, %s32_s8, [#allocation7]  }
  0x23   :  { %303 = dma.done.wait [#allocation4], 256  }
  0x24   :  { %304 = vsyncadd [#allocation4], 4294967040 }
  0x25   :  { %305 = dma.done.wait [#allocation7], 64  }
  0x26   :  { %306 = vsyncadd [#allocation7], 4294967232  ;;  %vm62_vm0 = vcmask 1043456   ;;  %v53_v0 = vld [vmem:[#allocation3] sm:$0xff]  ;;  %v54_v1 = vld [vmem:[#allocation3 + $0x8] sm:$0xff]  ;;  %vm51_vm1 = vcmask 25600   ;;  %v75_v13 = vlaneseq }
  0x27   :  { %v58_v2 = vcombine.high %v53_v0, %v53_v0  ;;  %v63_v3 = vsel %vm62_vm0, %v53_v0, 0.0  ;;  %v59_v4 = vcombine.high %v54_v1, %v54_v1  ;;  %v68_v6 = vsel %vm62_vm0, %v54_v1, 0.0  ;;  %v98_v29 = vld [vmem:[#allocation6] sm:$0xf]  ;;  %v214_v37 = vld [vmem:[%s399_s2] ss:$0 sm:$0xff] }
  0x28   :  { %v313_v10 = vmov 0.0   ;;  %v314_v11 = vmov 2   ;;  %v315_v12 = vmov 0   ;;  %v76_v14 = vand.u32 127, %v75_v13  ;;  %v99_v52 = vld [vmem:[%s400_s3] sm:$0xf] }
  0x29   :  { %v64_v5 = vsel %vm62_vm0, %v58_v2, 0.0  ;;  %v69_v7 = vsel %vm62_vm0, %v59_v4, 0.0  ;;  %52 = vst.msk [vmem:[#allocation2] sm:$0x3] %vm51_vm1, %v313_v10  ;;  %228 = vset.pattern.permute.xlu0 %v314_v11  ;;  %226 = vset.pattern.permute.xlu1 %v315_v12  ;;  %v78_v15 = vshrl.u32 %v75_v13, 7  ;;  %vm85_vm2 = vcmask 1041409  }
  0x2a   :  { %v65_v8 = vadd.f32 %v64_v5, %v63_v3  ;;  %v70_v9 = vadd.f32 %v69_v7, %v68_v6  ;;  %v316_v26 = vmov 1   ;;  %v317_v27 = vmov 3   ;;  %v215_v60 = vld [vmem:[%s401_s4] ss:$0 sm:$0xff]  ;;  %s318_s22 = smov [#allocation8]  }
  0x2b   :  { %v79_v17 = vsub.s32 %v76_v14, %v78_v15  ;;  %v113_v28 = vsub.s32 0, %v78_v15  ;;  %v133_v32 = vsub.s32 2, %v78_v15  ;;  %v123_v33 = vsub.s32 1, %v78_v15  ;;  %s204_s23 = sshll.u32 %s318_s22, 4  ;;  %s205_s23 = int_to_ptr.vmem [resolvable:$true] %s204_s23 }
  0x2c   :  { %66 = vadd.xlane.f32.xlu0 %v65_v8  ;;  %v143_v34 = vsub.s32 3, %v78_v15  ;;  %s281_s3 = scalar_lea.vmem %s205_s23, 32  ;;  %p286_p3 = scmp.lt.s32.totalorder %s205_s23, %s205_s23 }
  0x2d   :  { %v114_v31 = vrot.slane %v98_v29, %v113_v28  ;;  %v134_v38 = vrot.slane %v98_v29, %v133_v32  ;;  %v124_v39 = vrot.slane %v98_v29, %v123_v33  ;;  %v163_v54 = vrot.slane %v99_v52, %v113_v28  ;;  %p282_p2 = scmp.ne.s32.totalorder %s205_s23, %s281_s3  ;;  %p287_p4 = scmp.lt.s32.totalorder %s281_s3, %s281_s3 }
  0x2e   :  { %v144_v40 = vrot.slane %v98_v29, %v143_v34  ;;  %v183_v55 = vrot.slane %v99_v52, %v133_v32  ;;  %v173_v58 = vrot.slane %v99_v52, %v123_v33  ;;  %v193_v59 = vrot.slane %v99_v52, %v143_v34 }
  0x2f   :  { %p288_p5 = por %p287_p4, %p286_p3 }
  0x30   :  { %71 = vadd.xlane.f32.xlu0 %v70_v9  ;;  %v55_v20 = vld [vmem:[#allocation2] sm:$0x3] }
  0x31   :  { %p289_p6 = pnand %p288_p5, %p282_p2 }
  0xb9   :  { %v67_v16 = vpop.xlane.xlu0 %66 }
  0xba   :  { %v80_v19 = vrot.slane %v67_v16, %v79_v17 }
  0xbd   :  { %v72_v18 = vpop.xlane.xlu0 %71 }
  0xbe   :  { %v84_v21 = vrot.slane %v72_v18, %v79_v17 }
  0xc0   :  { %v86_v22 = vsel %vm85_vm2, %v84_v21, %v80_v19 }
  0xc1   :  { %v88_v23 = vadd.f32 %v86_v22, %v55_v20 }
  0xc3   :  { %90 = vst.msk [vmem:[#allocation2] sm:$0x3] %vm51_vm1, %v88_v23 }
  0xca   :  { %v94_v24 = vld [vmem:[#allocation2] sm:$0x3] }
  0xcb   :  { %v95_v25 = vmul.f32 0.00390625, %v94_v24 }
  0xcd   :  { %128 = vperm.xlu0 %228, %v95_v25   ;;  %108 = vperm.xlu1 %226, %v95_v25  }
  0xd1   :  { %227 = vset.pattern.permute.xlu1 %v316_v26  ;;  %234 = vset.pattern.permute.xlu0 %v317_v27 }
  0xd2   :  { %118 = vperm.xlu1 %227, %v95_v25  }
  0xd6   :  { %229 = vset.pattern.permute.xlu1 %v317_v27 }
  0xd7   :  { %138 = vperm.xlu1 %229, %v95_v25  }
  0xdb   :  { %230 = vset.pattern.permute.xlu1 %v315_v12 }
 0x14c   :  { %v109_v30 = vpop.permute.xlu1 %108  ;;  %v129_v41 = vpop.permute.xlu0 %128 }
 0x14d   :  { %v115_v35 = vmul.f32 %v114_v31, %v109_v30  ;;  %v135_v44 = vmul.f32 %v134_v38, %v129_v41 }
 0x14f   :  { %v116_v42 = vadd.f32 %v214_v37, %v115_v35 }
 0x151   :  { %v119_v36 = vpop.permute.xlu1 %118  ;;  %v136_v47 = vadd.f32 %v135_v44, %v116_v42 }
 0x152   :  { %v125_v45 = vmul.f32 %v124_v39, %v119_v36 }
 0x156   :  { %v139_v43 = vpop.permute.xlu1 %138 }
 0x157   :  { %v145_v46 = vmul.f32 %v144_v40, %v139_v43 }
 0x159   :  { %v146_v48 = vadd.f32 %v145_v46, %v125_v45 }
 0x15b   :  { %v147_v49 = vadd.f32 %v146_v48, %v136_v47 }
 0x15d   :  { %v148_v50 = vmax.f32 %v147_v49, 0.0 }
 0x15f   :  { %157 = vperm.xlu1 %230, %v148_v50  }
 0x163   :  { %231 = vset.pattern.permute.xlu1 %v316_v26 }
 0x164   :  { %167 = vperm.xlu1 %231, %v148_v50  }
 0x168   :  { %232 = vset.pattern.permute.xlu1 %v314_v11 }
 0x169   :  { %177 = vperm.xlu1 %232, %v148_v50  }
 0x16d   :  { %233 = vset.pattern.permute.xlu1 %v317_v27 }
 0x16e   :  { %187 = vperm.xlu1 %233, %v148_v50  }
 0x1de   :  { %v158_v51 = vpop.permute.xlu1 %157 }
 0x1df   :  { %v164_v57 = vmul.f32 %v163_v54, %v158_v51 }
 0x1e1   :  { %v165_v63 = vadd.f32 %v215_v60, %v164_v57 }
 0x1e3   :  { %v168_v53 = vpop.permute.xlu1 %167 }
 0x1e4   :  { %v174_v0 = vmul.f32 %v173_v58, %v168_v53 }
 0x1e8   :  { %v178_v56 = vpop.permute.xlu1 %177 }
 0x1e9   :  { %v184_v61 = vmul.f32 %v183_v55, %v178_v56 }
 0x1eb   :  { %v185_v2 = vadd.f32 %v184_v61, %v165_v63 }
 0x1ed   :  { %v188_v62 = vpop.permute.xlu1 %187 }
 0x1ee   :  { %v194_v1 = vmul.f32 %v193_v59, %v188_v62 }
 0x1f0   :  { %v195_v3 = vadd.f32 %v194_v1, %v174_v0 }
 0x1f2   :  { %v196_v4 = vadd.f32 %v195_v3, %v185_v2 }
 0x1f4   :  { %197 = vst.msk [vmem:[#allocation8] sm:$0x3] %vm51_vm1, %v196_v4 }
 0x1f5   :  { %292 = shalt.err (!%p289_p6)
}
 0x1f6   :  { %s293_s25 = scalar_lea.hbm %s402_s5, 32 }
 0x1f7   :  { %p294_p7 = scmp.ne.s32.totalorder %s402_s5, %s293_s25  ;;  %p297_p8 = scmp.lt.u32.totalorder %s293_s25, %s402_s5 }
 0x1f9   :  { %p299_p9 = pnand %p297_p8, %p294_p7 }
 0x1fb   :  { %302 = shalt.err (!%p299_p9)
}
 0x1fc   :  { %207 = dma.vmem_to_hbm [thread:$0]  %s205_s23, 32, %s402_s5, [#allocation5]  }
 0x1fd   :  { %307 = dma.done.wait [#allocation5], 32  }
 0x1fe   :  { %308 = vsyncadd [#allocation5], 4294967264 }
 0x1ff   :  { %211 = vsyncpa [#allocation4], 1 }
 0x200   :  { %212 = vsyncpa [#allocation7], 1 }
 0x201   :  { %213 = vsyncpa [#allocation5], 1 }

</bundles_post_ra>
